<compile_context>
chip_gen: v7x
topology: tpu7x:2x2x1
jax: 0.10.0
libtpu: 0.0.40
codegen_flags: <defaults>
</compile_context>

<pallas_src>
import jax
import jax.numpy as jnp
from jax.experimental import pallas as pl
from jax.experimental.pallas import tpu as pltpu

_LANES = 128
_SUBLANES = {4: 8, 2: 16}  # f32 -> 8-row tiles, bf16/f16 -> 16-row tiles


def _quant_kernel(x_ref, o_ref):
    x = jnp.clip(x_ref[...].astype(jnp.float32), -1.0, 1.0)
    # (x + 1) * 127.5 is bit-identical to (x + 1) / 2 * 255 in f32;
    # floor == uint8 truncation because the value is in [0, 255].
    q = jnp.floor((x + 1.0) * 127.5)
    o_ref[...] = q / 255.0 * 2.0 - 1.0  # same expression as the reference


def _quant_math(x):
    """Plain-jnp path for tiny / ragged remainders (identical math)."""
    xc = jnp.clip(x.astype(jnp.float32), -1.0, 1.0)
    q = jnp.floor((xc + 1.0) * 127.5)
    return q / 255.0 * 2.0 - 1.0


def _cdiv(a, b):
    return -(-a // b)


def _round_down(a, m):
    return (a // m) * m


def _round_up(a, m):
    return _cdiv(a, m) * m


def _chip_tuning():
    """(target block bytes, scoped VMEM limit) per chip generation."""
    try:
        kind = jax.devices()[0].device_kind.lower()
    except Exception:
        kind = ""
    if "v7" in kind:
        # 3.2 TB/s HBM: amortize the ~0.35us/step cost with bigger blocks.
        return 8 << 20, 48 << 20
    return 2 << 20, 32 << 20


def _pick_width(n_main):
    """Lane-dense slab width (multiple of 128) dividing the aligned prefix."""
    for w in (2048, 1024, 512, 256, 128):
        if n_main % w == 0 and n_main // w >= 8:
            return w
    return _LANES


def _pick_block_rows(rows, width, sub, target_block_bytes):
    row_bytes = 4 * width  # f32 output dominates per-row DMA/VMEM cost
    total = rows * row_bytes
    if rows <= sub or total <= (512 << 10):
        return rows  # tiny input: one whole-array block (exempt from (8,128))
    target_rows = max(sub, _round_down(target_block_bytes // row_bytes, sub))
    min_rows = max(sub, _round_down((512 << 10) // row_bytes, sub))  # block floor
    cap = max(sub, _round_down(rows // 4, sub))  # >= 4 grid steps when possible
    br = min(target_rows, cap)
    br = max(br, min_rows)
    br = min(br, rows)
    # Prefer an even grid (v7x: 2 TensorCores share the "parallel" axis).
    g = _cdiv(rows, br)
    if g > 2 and g % 2 == 1:
        br2 = _round_up(_cdiv(rows, g + 1), sub)
        if min_rows <= br2 < br and _cdiv(rows, br2) % 2 == 0:
            br = br2
    return br


def quantization(x: jax.Array) -> jax.Array:
    """Fake-quantize x to 8-bit levels on [-1, 1]. Returns float32, same shape."""
    orig_shape = x.shape
    n = int(x.size)
    if n == 0:
        return jnp.zeros(orig_shape, jnp.float32)

    # Normalize exotic dtypes once; keep f32/bf16/f16 narrow through the DMA.
    if (not jnp.issubdtype(x.dtype, jnp.floating)) or x.dtype.itemsize not in (2, 4):
        x = x.astype(jnp.float32)
    sub = _SUBLANES[x.dtype.itemsize]

    flat = x.reshape(-1)
    n_main = (n // _LANES) * _LANES
    tail = n - n_main
    if n_main == 0:  # fewer than 128 elements total
        return _quant_math(flat).reshape(orig_shape)

    main = flat if tail == 0 else flat[:n_main]
    width = _pick_width(n_main)
    rows = n_main // width

    target_block_bytes, vmem_limit = _chip_tuning()
    block_rows = _pick_block_rows(rows, width, sub, target_block_bytes)
    # Non-divisible row counts: cdiv grid, Pallas masks the partial last block
    # (no row padding, no extra HBM passes).
    grid = _cdiv(rows, block_rows)

    slab = main.reshape(rows, width)
    out = pl.pallas_call(
        _quant_kernel,
        out_shape=jax.ShapeDtypeStruct((rows, width), jnp.float32),
        grid_spec=pl.GridSpec(
            grid=(grid,),
            in_specs=[pl.BlockSpec((block_rows, width), lambda i: (i, 0))],
            out_specs=pl.BlockSpec((block_rows, width), lambda i: (i, 0)),
        ),
        compiler_params=pltpu.CompilerParams(
            dimension_semantics=("parallel",),
            vmem_limit_bytes=vmem_limit,
        ),
    )(slab)

    if tail == 0:
        return out.reshape(orig_shape)
    # Ragged (<128-element) remainder handled with plain jnp; no full-array pad.
    tail_out = _quant_math(flat[n_main:])
    return jnp.concatenate([out.reshape(-1), tail_out]).reshape(orig_shape)


def _reference(x: jax.Array) -> jax.Array:
    """Plain-JAX mirror of the PyTorch math (incl. the uint8 round-trip)."""
    xc = jnp.clip(x.astype(jnp.float32), -1.0, 1.0)
    q = jnp.floor((xc + 1.0) / 2.0 * 255.0).astype(jnp.uint8).astype(jnp.float32)
    return q / 255.0 * 2.0 - 1.0


if __name__ == "__main__":
    key = jax.random.PRNGKey(0)
    k1, k2, k3, k4, k5 = jax.random.split(key, 5)

    # Primary case: NCHW input (module spec); values beyond [-1, 1] hit the clamp.
    x = jax.random.normal(k1, (2, 4, 16, 16), dtype=jnp.float32) * 1.5
    y = quantization(x)
    jax.block_until_ready(y)
    assert y.shape == x.shape and y.dtype == jnp.float32
    assert float(jnp.max(jnp.abs(y - _reference(x)))) < 1e-6

    # Multi-block, evenly divisible path (grid > 1).
    x2 = jax.random.normal(k2, (4, 4, 256, 256), dtype=jnp.float32) * 1.5
    y2 = quantization(x2)
    jax.block_until_ready(y2)
    assert float(jnp.max(jnp.abs(y2 - _reference(x2)))) < 1e-6

    # Multi-block path with a masked (non-divisible) last block.
    x3 = jax.random.normal(k3, (4, 4, 160, 224), dtype=jnp.float32) * 1.5
    y3 = quantization(x3)
    jax.block_until_ready(y3)
    assert float(jnp.max(jnp.abs(y3 - _reference(x3)))) < 1e-6

    # Ragged element count (<128-element tail handled outside the kernel).
    x4 = jax.random.normal(k4, (3, 5, 7, 11), dtype=jnp.float32) * 1.5
    y4 = quantization(x4)
    jax.block_until_ready(y4)
    assert y4.shape == x4.shape
    assert float(jnp.max(jnp.abs(y4 - _reference(x4)))) < 1e-6

    # Narrow-dtype input (bf16 DMA'd directly, cast in-kernel).
    x5 = (jax.random.normal(k5, (2, 4, 16, 16), dtype=jnp.float32) * 1.5).astype(jnp.bfloat16)
    y5 = quantization(x5)
    jax.block_until_ready(y5)
    assert y5.dtype == jnp.float32
    assert float(jnp.max(jnp.abs(y5 - _reference(x5)))) < 1e-6

    print("KERNEL_OK")
</pallas_src>

<mosaic_0001>
module attributes {stable_mosaic.version = 11 : i64} {
  func.func @_quant_kernel(%arg0: i32, %arg1: memref<8x256xf32, #tpu.memory_space<vmem>>, %arg2: memref<8x256xf32, #tpu.memory_space<vmem>>) attributes {dimension_semantics = [#tpu.dimension_semantics<parallel>], iteration_bounds = array<i64: 1>, scalar_prefetch = 0 : i64, scratch_operands = 0 : i64, tpu.core_type = #tpu.core_type<tc>, window_params = [{transform_indices = @transform_0, window_bounds = array<i64: 8, 256>}, {transform_indices = @transform_1, window_bounds = array<i64: 8, 256>}]} {
    %c0 = arith.constant 0 : index
    %c0_0 = arith.constant 0 : index
    %0 = vector.load %arg1[%c0, %c0_0] : memref<8x256xf32, #tpu.memory_space<vmem>>, vector<8x256xf32>
    %cst = arith.constant -1.000000e+00 : f32
    %cst_1 = arith.constant 1.000000e+00 : f32
    %1 = vector.broadcast %cst : f32 to vector<8x256xf32>
    %2 = arith.maximumf %1, %0 : vector<8x256xf32>
    %3 = vector.broadcast %cst_1 : f32 to vector<8x256xf32>
    %4 = arith.minimumf %3, %2 : vector<8x256xf32>
    %cst_2 = arith.constant 1.000000e+00 : f32
    %5 = vector.broadcast %cst_2 : f32 to vector<8x256xf32>
    %6 = arith.addf %4, %5 : vector<8x256xf32>
    %cst_3 = arith.constant 1.275000e+02 : f32
    %7 = vector.broadcast %cst_3 : f32 to vector<8x256xf32>
    %8 = arith.mulf %6, %7 : vector<8x256xf32>
    %9 = math.floor %8 : vector<8x256xf32>
    %cst_4 = arith.constant 2.550000e+02 : f32
    %10 = vector.broadcast %cst_4 : f32 to vector<8x256xf32>
    %11 = arith.divf %9, %10 : vector<8x256xf32>
    %cst_5 = arith.constant 2.000000e+00 : f32
    %12 = vector.broadcast %cst_5 : f32 to vector<8x256xf32>
    %13 = arith.mulf %11, %12 : vector<8x256xf32>
    %cst_6 = arith.constant 1.000000e+00 : f32
    %14 = vector.broadcast %cst_6 : f32 to vector<8x256xf32>
    %15 = arith.subf %13, %14 : vector<8x256xf32>
    %c0_7 = arith.constant 0 : index
    %c0_8 = arith.constant 0 : index
    %16 = vector.load %arg2[%c0_7, %c0_8] : memref<8x256xf32, #tpu.memory_space<vmem>>, vector<8x256xf32>
    tpu.vector_store %arg2[%c0_7, %c0_8], %15 {strides = array<i32>} : memref<8x256xf32, #tpu.memory_space<vmem>>, vector<8x256xf32>,
    return
  }
  func.func @transform_0(%arg0: i32) -> (i32, i32) {
    %c0_i32 = arith.constant 0 : i32
    %c0_i32_0 = arith.constant 0 : i32
    return %arg0, %c0_i32 : i32, i32
  }
  func.func @transform_1(%arg0: i32) -> (i32, i32) {
    %c0_i32 = arith.constant 0 : i32
    %c0_i32_0 = arith.constant 0 : i32
    return %arg0, %c0_i32 : i32, i32
  }
}

</mosaic_0001>

<bundles_post_ra>
// kernel: tpu_custom_call.1
= control target key start
LH: loop header
LB: loop body
LE: loop exit
PB: predicated region body
PF: predicated region fallthrough
CT: control target
= control target key end

     0   :  { %6 = vsyncpa [#allocation3], 0  ;;  %s147_s0 = inlined_call_operand.hbm [shape: f32[8,256], index: 0, kind: input, shape index: {}]   ;;  %s148_s1 = inlined_call_operand.hbm [shape: f32[8,256], index: 1, kind: output, shape index: {}]  }
   0x1   :  { %7 = vsyncpa [#allocation4], 0  ;;  %s111_s6 = smov [#allocation2]   ;;  %s63_s10 = scalar_lea.hbm %s147_s0, 256 }
   0x2   :  { %s14_s7 = sshll.u32 %s111_s6, 4  ;;  %p64_p0 = scmp.ne.s32.totalorder %s147_s0, %s63_s10  ;;  %s15_s7 = int_to_ptr.vmem [resolvable:$true] %s14_s7 }
   0x3   :  { %p67_p1 = scmp.lt.u32.totalorder %s63_s10, %s147_s0 }
   0x5   :  { %p69_p2 = pnand %p67_p1, %p64_p0 }
   0x7   :  { %72 = shalt.err (!%p69_p2)
}
   0x8   :  { %s73_s15 = scalar_lea.vmem %s15_s7, 256  ;;  %p78_p4 = scmp.lt.s32.totalorder %s15_s7, %s15_s7 }
   0x9   :  { %p74_p3 = scmp.ne.s32.totalorder %s15_s7, %s73_s15  ;;  %p79_p5 = scmp.lt.s32.totalorder %s73_s15, %s73_s15 }
   0xb   :  { %p80_p6 = por %p79_p5, %p78_p4 }
   0xd   :  { %p81_p7 = pnand %p80_p6, %p74_p3 }
   0xf   :  { %84 = shalt.err (!%p81_p7)
}
  0x10   :  { %17 = dma.hbm_to_vmem [thread:$0]  %s147_s0, 256, %s15_s7, [#allocation3]  }
  0x11   :  { %107 = dma.done.wait [#allocation3], 256  }
  0x12   :  { %108 = vsyncadd [#allocation3], 4294967040  ;;  %v21_v0 = vld [vmem:[#allocation2] sm:$0xff]  ;;  %v22_v1 = vld [vmem:[#allocation2 + $0x8] sm:$0xff]  ;;  %s112_s18 = smov [#allocation5]  }
  0x13   :  { %v57_v2 = vclamps-f32 %v21_v0, 1.0  ;;  %v58_v3 = vclamps-f32 %v22_v1, 1.0  ;;  %s48_s19 = sshll.u32 %s112_s18, 4  ;;  %s49_s19 = int_to_ptr.vmem [resolvable:$true] %s48_s19 }
  0x14   :  { %s85_s0 = scalar_lea.vmem %s49_s19, 256  ;;  %p90_p9 = scmp.lt.s32.totalorder %s49_s19, %s49_s19 }
  0x15   :  { %v27_v4 = vadd.f32 1.0, %v57_v2  ;;  %v28_v5 = vadd.f32 1.0, %v58_v3  ;;  %p86_p8 = scmp.ne.s32.totalorder %s49_s19, %s85_s0  ;;  %p91_p10 = scmp.lt.s32.totalorder %s85_s0, %s85_s0 }
  0x17   :  { %v29_v6 = vmul.f32 127.5, %v27_v4  ;;  %v30_v7 = vmul.f32 127.5, %v28_v5  ;;  %p92_p11 = por %p91_p10, %p90_p9 }
  0x19   :  { %v31_v8 = vfloor.f32 %v29_v6  ;;  %v32_v9 = vfloor.f32 %v30_v7  ;;  %p93_p12 = pnand %p92_p11, %p86_p8 }
  0x1b   :  { %v34_v10 = vmul.f32 0.003921569, %v31_v8  ;;  %v35_v11 = vmul.f32 0.003921569, %v32_v9 }
  0x1d   :  { %v36_v12 = vmul.f32 2.0, %v34_v10  ;;  %v37_v13 = vmul.f32 2.0, %v35_v11 }
  0x1f   :  { %v59_v14 = vadd.f32 -1.0, %v36_v12  ;;  %v60_v15 = vadd.f32 -1.0, %v37_v13 }
  0x21   :  { %40 = vst [vmem:[#allocation5] sm:$0xff] %v59_v14  ;;  %41 = vst [vmem:[#allocation5 + $0x8] sm:$0xff] %v60_v15 }
  0x22   :  { %96 = shalt.err (!%p93_p12)
}
  0x23   :  { %s97_s22 = scalar_lea.hbm %s148_s1, 256 }
  0x24   :  { %p98_p13 = scmp.ne.s32.totalorder %s148_s1, %s97_s22  ;;  %p101_p0 = scmp.lt.u32.totalorder %s97_s22, %s148_s1 }
  0x26   :  { %p103_p1 = pnand %p101_p0, %p98_p13 }
  0x28   :  { %106 = shalt.err (!%p103_p1)
}
  0x29   :  { %51 = dma.vmem_to_hbm [thread:$0]  %s49_s19, 256, %s148_s1, [#allocation4]  }
  0x2a   :  { %109 = dma.done.wait [#allocation4], 256  }
  0x2b   :  { %110 = vsyncadd [#allocation4], 4294967040 }
  0x2c   :  { %55 = vsyncpa [#allocation3], 1 }
  0x2d   :  { %56 = vsyncpa [#allocation4], 1 }

</bundles_post_ra>
